<compile_context>
chip_gen: v6e
topology: v6e:2x2x1
jax: 0.10.0
libtpu: 0.0.40
codegen_flags: <defaults>
</compile_context>

<pallas_src>
import math

import jax
import jax.numpy as jnp
from jax.experimental import pallas as pl
from jax.experimental.pallas import tpu as pltpu

_LN2 = math.log(2.0)


def _logcosh_kernel(y_prime_ref, y_ref, out_ref):
    # Elementwise hot path: VPU for sub/abs/mul, EUP for exp/log1p.
    d = y_ref[...].astype(jnp.float32) - y_prime_ref[...].astype(jnp.float32)
    x = d + jnp.float32(1e-12)  # compatibility constant from the PyTorch module
    ax = jnp.abs(x)
    # Stable logcosh: |x| + log1p(exp(-2|x|)) - log(2); never overflows.
    out = ax + jnp.log1p(jnp.exp(jnp.float32(-2.0) * ax)) - jnp.float32(_LN2)
    out_ref[...] = out.astype(out_ref.dtype)


def _cdiv(a, b):
    return -(-a // b)


def _round_up(x, m):
    return ((x + m - 1) // m) * m


def _round_down(x, m):
    return (x // m) * m


def _launch_2d(y_prime_t, y_t, target_block_bytes):
    B, F = y_t.shape
    out_dtype = y_t.dtype
    itemsize = jnp.dtype(out_dtype).itemsize
    # Native sublane packing: (8,128) f32 vregs, (16,128) bf16, (32,128) 1-byte.
    sublane = {4: 8, 2: 16, 1: 32}.get(itemsize, 8)

    # Lane (last) dim: prefer the full feature width -> contiguous per-row DMAs and
    # wide lane-dense stores.  Cap only so a minimum-height tile still fits budget.
    max_cols = max(128, _round_down(target_block_bytes // (sublane * itemsize), 128))
    tile_cols = F if F <= max_cols else max_cols  # full-dim blocks are always legal

    # Sublane (second-to-last) dim from the per-stream byte budget.
    lane_width = max(tile_cols, 128)
    tile_rows = _round_down(
        max(target_block_bytes // (lane_width * itemsize), sublane), sublane)
    if tile_rows >= B:
        tile_rows = B  # single full-dim row block

    # v7x megacore: if everything collapsed to one grid tile, split the row axis
    # into >= 2 balanced "parallel" tiles so both TensorCores get work.
    if _cdiv(B, tile_rows) * _cdiv(F, tile_cols) < 2 and B > sublane:
        tile_rows = max(sublane, _round_up(_cdiv(B, 2), sublane))

    grid = (_cdiv(B, tile_rows), _cdiv(F, tile_cols))
    spec = pl.BlockSpec((tile_rows, tile_cols), lambda i, j: (i, j))

    return pl.pallas_call(
        _logcosh_kernel,
        out_shape=jax.ShapeDtypeStruct((B, F), out_dtype),
        grid_spec=pltpu.PrefetchScalarGridSpec(
            num_scalar_prefetch=0,
            grid=grid,
            in_specs=[spec, spec],
            out_specs=spec,
        ),
        compiler_params=pltpu.CompilerParams(
            dimension_semantics=("parallel", "parallel"),
            vmem_limit_bytes=32 << 20,
        ),
    )(y_prime_t, y_t)


def logcosh_loss(y_prime_t, y_t, *, target_block_bytes=4 << 20):
    """Pallas implementation of LogCoshLoss.forward (elementwise, no reduction)."""
    assert y_prime_t.shape == y_t.shape, "inputs must have the same shape"
    assert y_prime_t.dtype == y_t.dtype, "inputs must have the same dtype"
    B, F = y_t.shape

    # If the feature axis is not lane-aligned but the total element count can be
    # reshaped into a lane-dense slab, do so (row-major reshape is free): all DMAs
    # become contiguous and every store is wide and unmasked.
    if F % 128 != 0:
        total = B * F
        for width in (8192, 4096, 2048, 1024, 512, 256, 128):
            if total % width == 0:
                rows = total // width
                out = _launch_2d(
                    y_prime_t.reshape(rows, width),
                    y_t.reshape(rows, width),
                    target_block_bytes,
                )
                return out.reshape(B, F)

    return _launch_2d(y_prime_t, y_t, target_block_bytes)


def logcosh_ref_stable(y_prime_t, y_t):
    x = (y_t.astype(jnp.float32) - y_prime_t.astype(jnp.float32)) + 1e-12
    ax = jnp.abs(x)
    return ax + jnp.log1p(jnp.exp(-2.0 * ax)) - _LN2


if __name__ == "__main__":
    key = jax.random.PRNGKey(0)
    k1, k2, k3, k4, k5, k6, k7, k8 = jax.random.split(key, 8)

    # Case 1: aligned small shape, compare against the naive PyTorch definition.
    batch, n_features = 8, 128
    y_prime_t = jax.random.normal(k1, (batch, n_features), dtype=jnp.float32)
    y_t = jax.random.normal(k2, (batch, n_features), dtype=jnp.float32)
    out = jax.block_until_ready(logcosh_loss(y_prime_t, y_t))
    ref_naive = jnp.log(jnp.cosh((y_t - y_prime_t) + 1e-12))
    assert out.shape == (batch, n_features)
    assert jnp.allclose(out, ref_naive, atol=1e-6, rtol=1e-6)

    # Case 2: ragged shape (exercises masked edge tiles, no pad/slice path) with
    # large-magnitude differences (overflow-free logcosh).  Stable reference equals
    # log(cosh(.)) mathematically.
    B2, F2 = 37, 96
    yp2 = 50.0 * jax.random.normal(k3, (B2, F2), dtype=jnp.float32)
    y2 = 50.0 * jax.random.normal(k4, (B2, F2), dtype=jnp.float32)
    out2 = jax.block_until_ready(logcosh_loss(yp2, y2))
    ref2 = logcosh_ref_stable(yp2, y2)
    assert out2.shape == (B2, F2)
    assert jnp.all(jnp.isfinite(out2))
    assert jnp.allclose(out2, ref2, atol=1e-5, rtol=1e-5)

    # Case 3: bf16 inputs (exercises the 16-row sublane packing path); f32 math
    # inside the kernel, bf16 output to match the module's dtype behavior.
    B3, F3 = 16, 256
    yp3 = jax.random.normal(k5, (B3, F3), dtype=jnp.bfloat16)
    y3 = jax.random.normal(k6, (B3, F3), dtype=jnp.bfloat16)
    out3 = jax.block_until_ready(logcosh_loss(yp3, y3))
    ref3 = logcosh_ref_stable(yp3, y3)
    assert out3.shape == (B3, F3) and out3.dtype == jnp.bfloat16
    assert jnp.allclose(out3.astype(jnp.float32), ref3, atol=2e-2, rtol=2e-2)

    # Case 4: non-lane-aligned F whose total reshapes cleanly (exercises the free
    # flatten-to-lane-dense path).
    B4, F4 = 24, 96
    yp4 = jax.random.normal(k7, (B4, F4), dtype=jnp.float32)
    y4 = jax.random.normal(k8, (B4, F4), dtype=jnp.float32)
    out4 = jax.block_until_ready(logcosh_loss(yp4, y4))
    ref4 = logcosh_ref_stable(yp4, y4)
    assert out4.shape == (B4, F4)
    assert jnp.allclose(out4, ref4, atol=1e-6, rtol=1e-6)

    print("KERNEL_OK")
</pallas_src>

<mosaic_0001>
module attributes {stable_mosaic.version = 11 : i64} {
  func.func @_logcosh_kernel(%arg0: i32, %arg1: i32, %arg2: memref<8x128xf32, #tpu.memory_space<vmem>>, %arg3: memref<8x128xf32, #tpu.memory_space<vmem>>, %arg4: memref<8x128xf32, #tpu.memory_space<vmem>>) attributes {dimension_semantics = [#tpu.dimension_semantics<parallel>, #tpu.dimension_semantics<parallel>], iteration_bounds = array<i64: 1, 1>, scalar_prefetch = 0 : i64, scratch_operands = 0 : i64, tpu.core_type = #tpu.core_type<tc>, window_params = [{transform_indices = @transform_0, window_bounds = array<i64: 8, 128>}, {transform_indices = @transform_1, window_bounds = array<i64: 8, 128>}, {transform_indices = @transform_2, window_bounds = array<i64: 8, 128>}]} {
    %c0 = arith.constant 0 : index
    %c0_0 = arith.constant 0 : index
    %0 = vector.load %arg3[%c0, %c0_0] : memref<8x128xf32, #tpu.memory_space<vmem>>, vector<8x128xf32>
    %c0_1 = arith.constant 0 : index
    %c0_2 = arith.constant 0 : index
    %1 = vector.load %arg2[%c0_1, %c0_2] : memref<8x128xf32, #tpu.memory_space<vmem>>, vector<8x128xf32>
    %2 = arith.subf %0, %1 : vector<8x128xf32>
    %cst = arith.constant 9.99999996E-13 : f32
    %3 = vector.broadcast %cst : f32 to vector<8x128xf32>
    %4 = arith.addf %2, %3 : vector<8x128xf32>
    %5 = math.absf %4 : vector<8x128xf32>
    %cst_3 = arith.constant -2.000000e+00 : f32
    %6 = vector.broadcast %cst_3 : f32 to vector<8x128xf32>
    %7 = arith.mulf %6, %5 : vector<8x128xf32>
    %8 = math.exp %7 : vector<8x128xf32>
    %9 = math.log1p %8 : vector<8x128xf32>
    %10 = arith.addf %5, %9 : vector<8x128xf32>
    %cst_4 = arith.constant 0.693147182 : f32
    %11 = vector.broadcast %cst_4 : f32 to vector<8x128xf32>
    %12 = arith.subf %10, %11 : vector<8x128xf32>
    %c0_5 = arith.constant 0 : index
    %c0_6 = arith.constant 0 : index
    %13 = vector.load %arg4[%c0_5, %c0_6] : memref<8x128xf32, #tpu.memory_space<vmem>>, vector<8x128xf32>
    tpu.vector_store %arg4[%c0_5, %c0_6], %12 {strides = array<i32>} : memref<8x128xf32, #tpu.memory_space<vmem>>, vector<8x128xf32>,
    return
  }
  func.func @transform_0(%arg0: i32, %arg1: i32) -> (i32, i32) {
    %c0_i32 = arith.constant 0 : i32
    return %arg0, %arg1 : i32, i32
  }
  func.func @transform_1(%arg0: i32, %arg1: i32) -> (i32, i32) {
    %c0_i32 = arith.constant 0 : i32
    return %arg0, %arg1 : i32, i32
  }
  func.func @transform_2(%arg0: i32, %arg1: i32) -> (i32, i32) {
    %c0_i32 = arith.constant 0 : i32
    return %arg0, %arg1 : i32, i32
  }
}

</mosaic_0001>

<bundles_post_ra>
// kernel: tpu_custom_call.1
= control target key start
LH: loop header
LB: loop body
LE: loop exit
PB: predicated region body
PF: predicated region fallthrough
CT: control target
= control target key end

     0   :  { %7 = vsyncpa [#allocation3], 0  ;;  %s173_s0 = inlined_call_operand.hbm [shape: f32[8,128], index: 0, kind: input, shape index: {}]   ;;  %s174_s1 = inlined_call_operand.hbm [shape: f32[8,128], index: 1, kind: input, shape index: {}]   ;;  %s175_s2 = inlined_call_operand.hbm [shape: f32[8,128], index: 2, kind: output, shape index: {}]  }
   0x1   :  { %8 = vsyncpa [#allocation6], 0 }
   0x2   :  { %9 = vsyncpa [#allocation4], 0  ;;  %s146_s9 = smov [#allocation2]   ;;  %s147_s11 = smov [#allocation5]  }
   0x3   :  { %s16_s10 = sshll.u32 %s146_s9, 4  ;;  %s26_s12 = sshll.u32 %s147_s11, 4  ;;  %s17_s10 = int_to_ptr.vmem [resolvable:$true] %s16_s10  ;;  %s27_s12 = int_to_ptr.vmem [resolvable:$true] %s26_s12 }
   0x4   :  { %s88_s13 = scalar_lea.vmem %s17_s10, 128  ;;  %p93_p1 = scmp.lt.s32.totalorder %s17_s10, %s17_s10 }
   0x5   :  { %p89_p0 = scmp.ne.s32.totalorder %s17_s10, %s88_s13  ;;  %p94_p2 = scmp.lt.s32.totalorder %s88_s13, %s88_s13 }
   0x7   :  { %p95_p3 = por %p94_p2, %p93_p1 }
   0x9   :  { %p96_p4 = pnand %p95_p3, %p89_p0 }
   0xb   :  { %99 = shalt.err (!%p96_p4)
}
   0xc   :  { %19 = dma.hbm_to_vmem [thread:$0]  %s173_s0, 128, %s17_s10, [#allocation3]  }
   0xd   :  { %s108_s16 = scalar_lea.vmem %s27_s12, 128  ;;  %p113_p6 = scmp.lt.s32.totalorder %s27_s12, %s27_s12 }
   0xe   :  { %p109_p5 = scmp.ne.s32.totalorder %s27_s12, %s108_s16  ;;  %p114_p7 = scmp.lt.s32.totalorder %s108_s16, %s108_s16 }
  0x10   :  { %p115_p8 = por %p114_p7, %p113_p6 }
  0x12   :  { %p116_p9 = pnand %p115_p8, %p109_p5 }
  0x14   :  { %119 = shalt.err (!%p116_p9)
}
  0x15   :  { %29 = dma.hbm_to_vmem [thread:$0]  %s174_s1, 128, %s27_s12, [#allocation6]  }
  0x16   :  { %140 = dma.done.wait [#allocation3], 128  }
  0x17   :  { %141 = vsyncadd [#allocation3], 4294967168 }
  0x18   :  { %142 = dma.done.wait [#allocation6], 128  }
  0x19   :  { %143 = vsyncadd [#allocation6], 4294967168  ;;  %v36_v0 = vld [vmem:[#allocation5] sm:$0xff]  ;;  %v37_v1 = vld [vmem:[#allocation2] sm:$0xff]  ;;  %s148_s0 = smov [#allocation7]  }
  0x1a   :  { %v38_v2 = vsub.f32 %v36_v0, %v37_v1  ;;  %s62_s1 = sshll.u32 %s148_s0, 4  ;;  %s63_s1 = int_to_ptr.vmem [resolvable:$true] %s62_s1 }
  0x1b   :  { %s120_s19 = scalar_lea.vmem %s63_s1, 128  ;;  %p125_p11 = scmp.lt.s32.totalorder %s63_s1, %s63_s1 }
  0x1c   :  { %v39_v3 = vadd.f32 1e-12, %v38_v2  ;;  %p121_p10 = scmp.ne.s32.totalorder %s63_s1, %s120_s19  ;;  %p126_p12 = scmp.lt.s32.totalorder %s120_s19, %s120_s19 }
  0x1e   :  { %v40_v4 = vand.u32 2147483647, %v39_v3  ;;  %p127_p13 = por %p126_p12, %p125_p11 }
  0x20   :  { %v41_v5 = vmul.f32 -2.0, %v40_v4  ;;  %p128_p0 = pnand %p127_p13, %p121_p10 }
  0x22   :  { %v42_v6 = vmul.f32 1.442695, %v41_v5 }
  0x24   :  { %76 = vpow2.f32 %v42_v6 }
  0x31   :  { %v77_v7 = vpop.eup %76 }
  0x32   :  { %v44_v8 = vadd.f32 1.0, %v77_v7  ;;  %v47_v9 = vmul.f32 -0.5, %v77_v7  ;;  %v50_v11 = vand.u32 2147483647, %v77_v7 }
  0x34   :  { %78 = vlog2.f32 %v44_v8  ;;  %v48_v10 = vadd.f32 1.0, %v47_v9  ;;  %vm51_vm0 = vcmp.lt.f32.partialorder %v50_v11, 0.0004427343 }
  0x36   :  { %v49_v12 = vmul.f32 %v77_v7, %v48_v10 }
  0x41   :  { %v79_v13 = vpop.eup %78 }
  0x42   :  { %v46_v14 = vmul.f32 0.6931472, %v79_v13 }
  0x44   :  { %v52_v15 = vsel %vm51_vm0, %v49_v12, %v46_v14 }
  0x45   :  { %v53_v16 = vadd.f32 %v52_v15, %v40_v4 }
  0x47   :  { %v72_v17 = vadd.f32 -0.6931472, %v53_v16 }
  0x49   :  { %55 = vst [vmem:[#allocation7] sm:$0xff] %v72_v17 }
  0x4a   :  { %131 = shalt.err (!%p128_p0)
}
  0x4b   :  { %65 = dma.vmem_to_hbm [thread:$0]  %s63_s1, 128, %s175_s2, [#allocation4]  }
  0x4c   :  { %144 = dma.done.wait [#allocation4], 128  }
  0x4d   :  { %145 = vsyncadd [#allocation4], 4294967168 }
  0x4e   :  { %69 = vsyncpa [#allocation3], 1 }
  0x4f   :  { %70 = vsyncpa [#allocation6], 1 }
  0x50   :  { %71 = vsyncpa [#allocation4], 1 }

</bundles_post_ra>
